<compile_context>
chip_gen: v5e
topology: v5e:2x2
jax: 0.10.0
libtpu: 0.0.40
codegen_flags: <defaults>
</compile_context>

<pallas_src>
import functools

import jax
import jax.numpy as jnp
from jax.experimental import pallas as pl
from jax.experimental.pallas import tpu as pltpu

LN_EPS = 1e-5  # torch.nn.LayerNorm default


# --------------------------------------------------------------------------- #
# small helpers
# --------------------------------------------------------------------------- #
def _round_up(n, m):
    return ((n + m - 1) // m) * m


def _divisor_tile(n, cap):
    """Largest multiple of 8 that divides n and is <= cap (n: multiple of 8)."""
    cap = max(8, min(cap, n))
    t = (cap // 8) * 8
    while t > 8 and n % t:
        t -= 8
    return t


def _pad_and_tile(n, cap):
    """Pad n (to a multiple of 8) so a reasonable tile <= cap divides it."""
    cap = max(8, (min(cap, 1024) // 8) * 8)
    lo, hi = _round_up(n, 8), _round_up(n, cap)
    want = min(cap, lo, 32)
    for m in range(lo, hi + 1, 8):
        t = _divisor_tile(m, cap)
        if t >= want:
            return m, t
    return hi, cap


def _pad_axis(x, axis, new_len):
    pad = new_len - x.shape[axis]
    if pad <= 0:
        return x
    widths = [(0, 0)] * x.ndim
    widths[axis] = (0, pad)
    return jnp.pad(x, widths)


def _vmem_limit_bytes():
    """Per-generation VMEM limit (~3/4 of physical: ~48 MiB v7x, ~96 MiB v5e/v6e)."""
    phys = 64 * 1024 * 1024  # conservative default (v7x-sized)
    try:
        info = pltpu.get_tpu_info()
        for name in ("vmem_capacity_bytes", "vmem_size_bytes"):
            val = getattr(info, name, None)
            if val:
                phys = int(val)
                break
    except Exception:
        pass
    return max(32 * 1024 * 1024, min((phys * 3) // 4, 112 * 1024 * 1024))


def _layer_norm(x, gamma, beta):
    # one-pass statistics: var = E[x^2] - E[x]^2
    mean = jnp.mean(x, axis=-1, keepdims=True)
    mean_sq = jnp.mean(x * x, axis=-1, keepdims=True)
    var = jnp.maximum(mean_sq - mean * mean, 0.0)
    return (x - mean) * jax.lax.rsqrt(var + LN_EPS) * gamma + beta


# --------------------------------------------------------------------------- #
# single path: weighted layer-combine (reduction grid axis) -> LN -> MLP
# grid = (B, Lp/TL, NLp/NC); seq_emb_s block (1, TL, NC, D)
# --------------------------------------------------------------------------- #
def _single_kernel(s_ref, w_ref, g_ref, be_ref, w1_ref, b1_ref, w2_ref, b2_ref,
                   out_ref, acc_ref):
    n = pl.program_id(2)

    # weighted ESM-layer combine for this layer chunk: one broadcast multiply
    # + sublane reduction (no per-layer strided slices).
    s = s_ref[0].astype(jnp.float32)               # (TL, NC, D)
    w = w_ref[...].astype(jnp.float32)             # (NC, 1)
    part = jnp.sum(s * w[None, :, :], axis=1)      # (TL, D)

    @pl.when(n == 0)
    def _():
        acc_ref[...] = jnp.zeros_like(acc_ref)

    acc_ref[...] += part

    @pl.when(n == pl.num_programs(2) - 1)
    def _():
        x = _layer_norm(acc_ref[...], g_ref[...], be_ref[...])
        h = jnp.dot(x.astype(jnp.bfloat16), w1_ref[...],
                    preferred_element_type=jnp.float32) + b1_ref[...]
        h = jnp.maximum(h, 0.0)
        y = jnp.dot(h.astype(jnp.bfloat16), w2_ref[...],
                    preferred_element_type=jnp.float32) + b2_ref[...]
        out_ref[0] = y.astype(out_ref.dtype)


# --------------------------------------------------------------------------- #
# pair path: LN -> Linear(E,P) -> ReLU -> Linear(P,P) + one-hot @ pos_emb
# grid = (B, Lp/TI, Lp/TJ); z block (1, TI, TJ, E)
# --------------------------------------------------------------------------- #
def _pair_kernel(bins, z_ref, ir_ref, ic_ref, mr_ref, mc_ref,
                 g_ref, be_ref, w1_ref, b1_ref, w2_ref, b2_ref, pe_ref, out_ref):
    _, TI, TJ, E = z_ref.shape
    P = w2_ref.shape[1]
    Vp = pe_ref.shape[0]
    T = TI * TJ

    # LayerNorm -> MLP with bf16 MXU operands and f32 accumulation.
    z = z_ref[0].astype(jnp.float32).reshape(T, E)
    x = _layer_norm(z, g_ref[...], be_ref[...])
    h = jnp.dot(x.astype(jnp.bfloat16), w1_ref[...],
                preferred_element_type=jnp.float32) + b1_ref[...]
    h = jnp.maximum(h, 0.0)
    y = jnp.dot(h.astype(jnp.bfloat16), w2_ref[...],
                preferred_element_type=jnp.float32) + b2_ref[...]

    # relative-position one-hot, built entirely in sublane (row-major) layout:
    # diff[i, j] = idx[j] - idx[i], clipped/offset, 0 where the pair is masked.
    idx_i = ir_ref[0][:, None, :]                       # (TI, 1, 1) int32
    idx_j = ic_ref[0][None, :, :]                       # (1, TJ, 1) int32
    diff = jnp.clip(idx_j - idx_i, -bins, bins) + (bins + 1)
    pm = (mr_ref[0][:, None, :] * mc_ref[0][None, :, :]) > 0.5
    diff = jnp.where(pm, diff, 0)                       # (TI, TJ, 1)
    lanes = jax.lax.broadcasted_iota(jnp.int32, (TI, TJ, Vp), 2)
    onehot = (lanes == diff).astype(jnp.bfloat16).reshape(T, Vp)
    y = y + jnp.dot(onehot, pe_ref[...], preferred_element_type=jnp.float32)

    out_ref[0] = y.reshape(TI, TJ, P).astype(out_ref.dtype)


# --------------------------------------------------------------------------- #
# wrapper
# --------------------------------------------------------------------------- #
def sequence_to_trunk_forward(params, seq_emb_s, seq_emb_z, res_idx, res_mask,
                              out_dtype=jnp.float32):
    f32, bf16 = jnp.float32, jnp.bfloat16
    B, L, NL, D = seq_emb_s.shape
    E = seq_emb_z.shape[-1]
    DS = params["single_w1"].shape[1]
    P = params["pair_w2"].shape[1]
    V = params["pos_emb"].shape[0]
    bins = (V - 2) // 2

    vmem_limit = _vmem_limit_bytes()
    tile_budget = vmem_limit // 2          # the rest: weights (x2 buffers) + slack

    # ------------------------------ single path ------------------------------ #
    s_item = seq_emb_s.dtype.itemsize
    D_pad, DS_pad = _round_up(D, 128), _round_up(DS, 128)

    # chunk the ESM-layer axis so a (TL~256, NC, D) block fits the budget
    nc_cap = max(8, tile_budget // max(2 * 256 * D_pad * s_item, 1))
    if NL <= nc_cap:
        NC, NLp = NL, NL
    else:
        NC = max(8, min((nc_cap // 8) * 8, (NL // 8) * 8))
        NLp = _round_up(NL, NC)

    per_row_s = (2 * NC * D_pad * s_item      # input block (double buffered)
                 + 2 * DS_pad * 4             # output block (double buffered)
                 + D_pad * (4 + 4 + 2)        # acc scratch + LN out f32/bf16
                 + DS_pad * (4 + 2 + 4))      # h f32, h bf16, y f32
    Lp_s, TL = _pad_and_tile(L, max(8, min(tile_budget // per_row_s, 512)))

    s_in = _pad_axis(_pad_axis(seq_emb_s, 2, NLp), 1, Lp_s)
    w_nl = jax.nn.softmax(params["esm_single_combine"].astype(f32), axis=0)
    w_nl = _pad_axis(w_nl, 0, NLp).reshape(NLp, 1)

    single = pl.pallas_call(
        _single_kernel,
        out_shape=jax.ShapeDtypeStruct((B, Lp_s, DS), out_dtype),
        grid=(B, Lp_s // TL, NLp // NC),
        in_specs=[
            pl.BlockSpec((1, TL, NC, D), lambda b, l, n: (b, l, n, 0)),  # seq_emb_s
            pl.BlockSpec((NC, 1), lambda b, l, n: (n, 0)),               # combine w
            pl.BlockSpec((1, D), lambda b, l, n: (0, 0)),                # ln gamma
            pl.BlockSpec((1, D), lambda b, l, n: (0, 0)),                # ln beta
            pl.BlockSpec((D, DS), lambda b, l, n: (0, 0)),               # w1 (bf16)
            pl.BlockSpec((1, DS), lambda b, l, n: (0, 0)),               # b1
            pl.BlockSpec((DS, DS), lambda b, l, n: (0, 0)),              # w2 (bf16)
            pl.BlockSpec((1, DS), lambda b, l, n: (0, 0)),               # b2
        ],
        out_specs=pl.BlockSpec((1, TL, DS), lambda b, l, n: (b, l, 0)),
        scratch_shapes=[pltpu.VMEM((TL, D), jnp.float32)],
        compiler_params=pltpu.CompilerParams(
            dimension_semantics=("parallel", "parallel", "arbitrary"),
            vmem_limit_bytes=vmem_limit),
    )(s_in, w_nl,
      params["single_ln_g"].astype(f32), params["single_ln_b"].astype(f32),
      params["single_w1"].astype(bf16), params["single_b1"].astype(f32),
      params["single_w2"].astype(bf16), params["single_b2"].astype(f32))
    if Lp_s != L:
        single = single[:, :L]

    # ------------------------------- pair path ------------------------------- #
    z_item = seq_emb_z.dtype.itemsize
    out_item = jnp.dtype(out_dtype).itemsize
    E_pad, P_pad = _round_up(E, 128), _round_up(P, 128)
    Vp = _round_up(V, 128)

    per_row_p = (2 * E_pad * z_item           # z block (double buffered)
                 + 2 * P_pad * out_item       # out block (double buffered)
                 + E_pad * (4 + 2)            # LN out f32 + bf16 copy
                 + P_pad * (4 + 2 + 4)        # h f32, h bf16, y f32
                 + Vp * (4 + 2)               # iota compare + bf16 one-hot
                 + 128 * 8)                   # diff / pair-mask (lane-padded)
    Lp_p, TJ = _pad_and_tile(L, 128)
    TI = _divisor_tile(Lp_p, max(8, min(tile_budget // (TJ * per_row_p), 128)))

    z_in = seq_emb_z
    idx_in = res_idx.astype(jnp.int32)
    msk_in = res_mask.astype(f32)
    if Lp_p != L:
        z_in = jnp.pad(z_in, ((0, 0), (0, Lp_p - L), (0, Lp_p - L), (0, 0)))
        idx_in = _pad_axis(idx_in, 1, Lp_p)
        msk_in = _pad_axis(msk_in, 1, Lp_p)
    idx_in = idx_in.reshape(B, Lp_p, 1)   # sublane layout for both row/col roles
    msk_in = msk_in.reshape(B, Lp_p, 1)

    pos_emb = _pad_axis(params["pos_emb"].astype(f32), 0, Vp).astype(bf16)

    pair = pl.pallas_call(
        functools.partial(_pair_kernel, bins),
        out_shape=jax.ShapeDtypeStruct((B, Lp_p, Lp_p, P), out_dtype),
        grid=(B, Lp_p // TI, Lp_p // TJ),
        in_specs=[
            pl.BlockSpec((1, TI, TJ, E), lambda b, i, j: (b, i, j, 0)),  # z tile
            pl.BlockSpec((1, TI, 1), lambda b, i, j: (b, i, 0)),         # idx rows
            pl.BlockSpec((1, TJ, 1), lambda b, i, j: (b, j, 0)),         # idx cols
            pl.BlockSpec((1, TI, 1), lambda b, i, j: (b, i, 0)),         # mask rows
            pl.BlockSpec((1, TJ, 1), lambda b, i, j: (b, j, 0)),         # mask cols
            pl.BlockSpec((1, E), lambda b, i, j: (0, 0)),                # ln gamma
            pl.BlockSpec((1, E), lambda b, i, j: (0, 0)),                # ln beta
            pl.BlockSpec((E, P), lambda b, i, j: (0, 0)),                # w1 (bf16)
            pl.BlockSpec((1, P), lambda b, i, j: (0, 0)),                # b1
            pl.BlockSpec((P, P), lambda b, i, j: (0, 0)),                # w2 (bf16)
            pl.BlockSpec((1, P), lambda b, i, j: (0, 0)),                # b2
            pl.BlockSpec((Vp, P), lambda b, i, j: (0, 0)),               # pos_emb
        ],
        out_specs=pl.BlockSpec((1, TI, TJ, P), lambda b, i, j: (b, i, j, 0)),
        compiler_params=pltpu.CompilerParams(
            dimension_semantics=("parallel", "parallel", "parallel"),
            vmem_limit_bytes=vmem_limit),
    )(z_in, idx_in, idx_in, msk_in, msk_in,
      params["pair_ln_g"].astype(f32), params["pair_ln_b"].astype(f32),
      params["pair_w1"].astype(bf16), params["pair_b1"].astype(f32),
      params["pair_w2"].astype(bf16), params["pair_b2"].astype(f32),
      pos_emb)
    if Lp_p != L:
        pair = pair[:, :L, :L]

    return single, pair


# --------------------------------------------------------------------------- #
# deterministic parameter init (synthetic; matches module __init__ shapes)
# --------------------------------------------------------------------------- #
def init_params(key, esm_single_dim, num_layers, d_single, esm_attn_dim, d_pair,
                position_bins, pairwise_state_dim):
    assert pairwise_state_dim == d_pair
    ks = jax.random.split(key, 5)

    def lin(k, fan_in, fan_out):
        return jax.random.normal(k, (fan_in, fan_out), jnp.float32) / jnp.sqrt(
            jnp.float32(fan_in))

    return {
        "esm_single_combine": jnp.zeros((num_layers + 1,), jnp.float32),
        "single_ln_g": jnp.ones((1, esm_single_dim), jnp.float32),
        "single_ln_b": jnp.zeros((1, esm_single_dim), jnp.float32),
        "single_w1": lin(ks[0], esm_single_dim, d_single),
        "single_b1": 0.01 * jnp.ones((1, d_single), jnp.float32),
        "single_w2": lin(ks[1], d_single, d_single),
        "single_b2": 0.01 * jnp.ones((1, d_single), jnp.float32),
        "pair_ln_g": jnp.ones((1, esm_attn_dim), jnp.float32),
        "pair_ln_b": jnp.zeros((1, esm_attn_dim), jnp.float32),
        "pair_w1": lin(ks[2], esm_attn_dim, d_pair),
        "pair_b1": 0.01 * jnp.ones((1, d_pair), jnp.float32),
        "pair_w2": lin(ks[3], d_pair, d_pair),
        "pair_b2": 0.01 * jnp.ones((1, d_pair), jnp.float32),
        "pos_emb": jax.random.normal(ks[4], (2 * position_bins + 2,
                                             pairwise_state_dim), jnp.float32),
    }


# pure-JAX reference for correctness check
def reference_forward(params, seq_emb_s, seq_emb_z, res_idx, res_mask):
    f32 = jnp.float32
    w = jax.nn.softmax(params["esm_single_combine"].astype(f32), axis=0)
    combined = jnp.einsum("n,blnd->bld", w, seq_emb_s.astype(f32))

    def ln(x, g, b):
        mu = x.mean(-1, keepdims=True)
        var = ((x - mu) ** 2).mean(-1, keepdims=True)
        return (x - mu) / jnp.sqrt(var + LN_EPS) * g.reshape(-1) + b.reshape(-1)

    x = ln(combined, params["single_ln_g"], params["single_ln_b"])
    h = jnp.maximum(x @ params["single_w1"] + params["single_b1"].reshape(-1), 0.0)
    single = h @ params["single_w2"] + params["single_b2"].reshape(-1)

    z = ln(seq_emb_z.astype(f32), params["pair_ln_g"], params["pair_ln_b"])
    hz = jnp.maximum(z @ params["pair_w1"] + params["pair_b1"].reshape(-1), 0.0)
    pair = hz @ params["pair_w2"] + params["pair_b2"].reshape(-1)

    bins = (params["pos_emb"].shape[0] - 2) // 2
    idx = res_idx.astype(jnp.int32)
    diff = idx[:, None, :] - idx[:, :, None]
    diff = jnp.clip(diff, -bins, bins) + bins + 1
    pm = (res_mask[:, None, :] * res_mask[:, :, None]) > 0.5
    diff = jnp.where(pm, diff, 0)
    pos = params["pos_emb"][diff]
    return single, pair + pos


if __name__ == "__main__":
    B, L = 2, 8
    num_layers = 3            # -> NL = 4 ESM layers combined
    esm_single_dim, d_single = 32, 32
    esm_attn_dim, d_pair = 16, 32
    position_bins = 4
    pairwise_state_dim = d_pair

    key = jax.random.PRNGKey(0)
    kp, ks, kz = jax.random.split(key, 3)
    params = init_params(kp, esm_single_dim, num_layers, d_single, esm_attn_dim,
                         d_pair, position_bins, pairwise_state_dim)

    seq_emb_s = jax.random.normal(ks, (B, L, num_layers + 1, esm_single_dim),
                                  jnp.float32)
    seq_emb_z = jax.random.normal(kz, (B, L, L, esm_attn_dim), jnp.float32)
    res_idx = jnp.broadcast_to(jnp.arange(L, dtype=jnp.int32), (B, L))
    res_mask = jnp.ones((B, L), jnp.float32).at[1, L - 2:].set(0.0)

    single, pair = sequence_to_trunk_forward(params, seq_emb_s, seq_emb_z,
                                             res_idx, res_mask)
    jax.block_until_ready((single, pair))

    ref_single, ref_pair = reference_forward(params, seq_emb_s, seq_emb_z,
                                             res_idx, res_mask)
    assert single.shape == (B, L, d_single) and pair.shape == (B, L, L, d_pair)
    # bf16 MXU operands with f32 accumulation: relaxed tolerance vs f32 reference.
    assert jnp.allclose(single, ref_single, atol=5e-2, rtol=5e-2)
    assert jnp.allclose(pair, ref_pair, atol=5e-2, rtol=5e-2)
    print("KERNEL_OK")
</pallas_src>

<mosaic_0001>
module attributes {stable_mosaic.version = 11 : i64} {
  func.func @_single_kernel(%arg0: i32, %arg1: i32, %arg2: i32, %arg3: memref<1x8x4x32xf32, #tpu.memory_space<vmem>>, %arg4: memref<4x1xf32, #tpu.memory_space<vmem>>, %arg5: memref<1x32xf32, #tpu.memory_space<vmem>>, %arg6: memref<1x32xf32, #tpu.memory_space<vmem>>, %arg7: memref<32x32xbf16, #tpu.memory_space<vmem>>, %arg8: memref<1x32xf32, #tpu.memory_space<vmem>>, %arg9: memref<32x32xbf16, #tpu.memory_space<vmem>>, %arg10: memref<1x32xf32, #tpu.memory_space<vmem>>, %arg11: memref<1x8x32xf32, #tpu.memory_space<vmem>>, %arg12: memref<8x32xf32, #tpu.memory_space<vmem>>) attributes {dimension_semantics = [#tpu.dimension_semantics<parallel>, #tpu.dimension_semantics<parallel>, #tpu.dimension_semantics<arbitrary>], iteration_bounds = array<i64: 2, 1, 1>, scalar_prefetch = 0 : i64, scratch_operands = 1 : i64, tpu.core_type = #tpu.core_type<tc>, window_params = [{transform_indices = @transform_0, window_bounds = array<i64: 1, 8, 4, 32>}, {transform_indices = @transform_1, window_bounds = array<i64: 4, 1>}, {pipeline_mode = #tpu.pipeline_mode<synchronous>, transform_indices = @transform_2, window_bounds = array<i64: 1, 32>}, {pipeline_mode = #tpu.pipeline_mode<synchronous>, transform_indices = @transform_3, window_bounds = array<i64: 1, 32>}, {pipeline_mode = #tpu.pipeline_mode<synchronous>, transform_indices = @transform_4, window_bounds = array<i64: 32, 32>}, {pipeline_mode = #tpu.pipeline_mode<synchronous>, transform_indices = @transform_5, window_bounds = array<i64: 1, 32>}, {pipeline_mode = #tpu.pipeline_mode<synchronous>, transform_indices = @transform_6, window_bounds = array<i64: 32, 32>}, {pipeline_mode = #tpu.pipeline_mode<synchronous>, transform_indices = @transform_7, window_bounds = array<i64: 1, 32>}, {transform_indices = @transform_8, window_bounds = array<i64: 1, 8, 32>}]} {
    %c0 = arith.constant 0 : index
    %c0_0 = arith.constant 0 : index
    %c0_1 = arith.constant 0 : index
    %c0_2 = arith.constant 0 : index
    %0 = vector.load %arg3[%c0, %c0_0, %c0_1, %c0_2] : memref<1x8x4x32xf32, #tpu.memory_space<vmem>>, vector<1x8x4x32xf32>
    %1 = vector.shape_cast %0 : vector<1x8x4x32xf32> to vector<8x4x32xf32>
    %c0_3 = arith.constant 0 : index
    %c0_4 = arith.constant 0 : index
    %2 = vector.load %arg4[%c0_3, %c0_4] : memref<4x1xf32, #tpu.memory_space<vmem>>, vector<4x1xf32>
    %3 = vector.shape_cast %2 : vector<4x1xf32> to vector<1x4x1xf32>
    %4 = vector.broadcast %3 : vector<1x4x1xf32> to vector<8x4x32xf32>
    %5 = arith.mulf %1, %4 : vector<8x4x32xf32>
    %cst = arith.constant dense<0.000000e+00> : vector<8x32xf32>
    %6 = vector.multi_reduction <add>, %5, %cst [1] : vector<8x4x32xf32> to vector<8x32xf32>
    %c0_i32 = arith.constant 0 : i32
    %7 = arith.cmpi eq, %arg2, %c0_i32 : i32
    %8 = arith.extui %7 : i1 to i32
    %c0_i32_5 = arith.constant 0 : i32
    %9 = arith.cmpi ne, %8, %c0_i32_5 : i32
    scf.if %9 {
      %cst_12 = arith.constant 0.000000e+00 : f32
      %16 = vector.broadcast %cst_12 : f32 to vector<8x32xf32>
      %c0_13 = arith.constant 0 : index
      %c0_14 = arith.constant 0 : index
      %17 = vector.load %arg12[%c0_13, %c0_14] : memref<8x32xf32, #tpu.memory_space<vmem>>, vector<8x32xf32>
      tpu.vector_store %arg12[%c0_13, %c0_14], %16 {strides = array<i32>} : memref<8x32xf32, #tpu.memory_space<vmem>>, vector<8x32xf32>,
    } else {
    }
    %c0_6 = arith.constant 0 : index
    %c0_7 = arith.constant 0 : index
    %10 = vector.load %arg12[%c0_6, %c0_7] : memref<8x32xf32, #tpu.memory_space<vmem>>, vector<8x32xf32>
    %11 = arith.addf %10, %6 : vector<8x32xf32>
    %c0_8 = arith.constant 0 : index
    %c0_9 = arith.constant 0 : index
    %12 = vector.load %arg12[%c0_8, %c0_9] : memref<8x32xf32, #tpu.memory_space<vmem>>, vector<8x32xf32>
    tpu.vector_store %arg12[%c0_8, %c0_9], %11 {strides = array<i32>} : memref<8x32xf32, #tpu.memory_space<vmem>>, vector<8x32xf32>,
    %c0_i32_10 = arith.constant 0 : i32
    %13 = arith.cmpi eq, %arg2, %c0_i32_10 : i32
    %14 = arith.extui %13 : i1 to i32
    %c0_i32_11 = arith.constant 0 : i32
    %15 = arith.cmpi ne, %14, %c0_i32_11 : i32
    scf.if %15 {
      %c0_12 = arith.constant 0 : index
      %c0_13 = arith.constant 0 : index
      %16 = vector.load %arg12[%c0_12, %c0_13] : memref<8x32xf32, #tpu.memory_space<vmem>>, vector<8x32xf32>
      %c0_14 = arith.constant 0 : index
      %c0_15 = arith.constant 0 : index
      %17 = vector.load %arg5[%c0_14, %c0_15] : memref<1x32xf32, #tpu.memory_space<vmem>>, vector<1x32xf32>
      %c0_16 = arith.constant 0 : index
      %c0_17 = arith.constant 0 : index
      %18 = vector.load %arg6[%c0_16, %c0_17] : memref<1x32xf32, #tpu.memory_space<vmem>>, vector<1x32xf32>
      %cst_18 = arith.constant dense<0.000000e+00> : vector<8xf32>
      %19 = vector.multi_reduction <add>, %16, %cst_18 [1] : vector<8x32xf32> to vector<8xf32>
      %20 = vector.shape_cast %19 : vector<8xf32> to vector<8x1xf32>
      %cst_19 = arith.constant 3.200000e+01 : f32
      %21 = vector.broadcast %cst_19 : f32 to vector<8x1xf32>
      %22 = arith.divf %20, %21 : vector<8x1xf32>
      %23 = arith.mulf %16, %16 : vector<8x32xf32>
      %cst_20 = arith.constant dense<0.000000e+00> : vector<8xf32>
      %24 = vector.multi_reduction <add>, %23, %cst_20 [1] : vector<8x32xf32> to vector<8xf32>
      %25 = vector.shape_cast %24 : vector<8xf32> to vector<8x1xf32>
      %cst_21 = arith.constant 3.200000e+01 : f32
      %26 = vector.broadcast %cst_21 : f32 to vector<8x1xf32>
      %27 = arith.divf %25, %26 : vector<8x1xf32>
      %28 = arith.mulf %22, %22 : vector<8x1xf32>
      %29 = arith.subf %27, %28 : vector<8x1xf32>
      %cst_22 = arith.constant 0.000000e+00 : f32
      %30 = vector.broadcast %cst_22 : f32 to vector<8x1xf32>
      %31 = arith.maximumf %29, %30 : vector<8x1xf32>
      %32 = vector.broadcast %22 : vector<8x1xf32> to vector<8x32xf32>
      %33 = arith.subf %16, %32 : vector<8x32xf32>
      %cst_23 = arith.constant 9.99999974E-6 : f32
      %34 = vector.broadcast %cst_23 : f32 to vector<8x1xf32>
      %35 = arith.addf %31, %34 : vector<8x1xf32>
      %36 = math.rsqrt %35 : vector<8x1xf32>
      %37 = vector.broadcast %36 : vector<8x1xf32> to vector<8x32xf32>
      %38 = arith.mulf %33, %37 : vector<8x32xf32>
      %39 = vector.broadcast %17 : vector<1x32xf32> to vector<8x32xf32>
      %40 = arith.mulf %38, %39 : vector<8x32xf32>
      %41 = vector.broadcast %18 : vector<1x32xf32> to vector<8x32xf32>
      %42 = arith.addf %40, %41 : vector<8x32xf32>
      %43 = arith.truncf %42 : vector<8x32xf32> to vector<8x32xbf16>
      %c0_24 = arith.constant 0 : index
      %c0_25 = arith.constant 0 : index
      %44 = vector.load %arg7[%c0_24, %c0_25] : memref<32x32xbf16, #tpu.memory_space<vmem>>, vector<32x32xbf16>
      %cst_26 = arith.constant dense<0.000000e+00> : vector<8x32xf32>
      %45 = tpu.matmul %43, %44, %cst_26 {dimension_numbers = #tpu.dot_dimension_numbers<[1], [0], [0], [1], [0, 0, 1, 1], [], []>} : vector<8x32xbf16>, vector<32x32xbf16>, vector<8x32xf32> -> vector<8x32xf32>
      %c0_27 = arith.constant 0 : index
      %c0_28 = arith.constant 0 : index
      %46 = vector.load %arg8[%c0_27, %c0_28] : memref<1x32xf32, #tpu.memory_space<vmem>>, vector<1x32xf32>
      %47 = vector.broadcast %46 : vector<1x32xf32> to vector<8x32xf32>
      %48 = arith.addf %45, %47 : vector<8x32xf32>
      %cst_29 = arith.constant 0.000000e+00 : f32
      %49 = vector.broadcast %cst_29 : f32 to vector<8x32xf32>
      %50 = arith.maximumf %48, %49 : vector<8x32xf32>
      %51 = arith.truncf %50 : vector<8x32xf32> to vector<8x32xbf16>
      %c0_30 = arith.constant 0 : index
      %c0_31 = arith.constant 0 : index
      %52 = vector.load %arg9[%c0_30, %c0_31] : memref<32x32xbf16, #tpu.memory_space<vmem>>, vector<32x32xbf16>
      %cst_32 = arith.constant dense<0.000000e+00> : vector<8x32xf32>
      %53 = tpu.matmul %51, %52, %cst_32 {dimension_numbers = #tpu.dot_dimension_numbers<[1], [0], [0], [1], [0, 0, 1, 1], [], []>} : vector<8x32xbf16>, vector<32x32xbf16>, vector<8x32xf32> -> vector<8x32xf32>
      %c0_33 = arith.constant 0 : index
      %c0_34 = arith.constant 0 : index
      %54 = vector.load %arg10[%c0_33, %c0_34] : memref<1x32xf32, #tpu.memory_space<vmem>>, vector<1x32xf32>
      %55 = vector.broadcast %54 : vector<1x32xf32> to vector<8x32xf32>
      %56 = arith.addf %53, %55 : vector<8x32xf32>
      %c0_35 = arith.constant 0 : index
      %c0_36 = arith.constant 0 : index
      %c0_37 = arith.constant 0 : index
      %57 = vector.load %arg11[%c0_35, %c0_36, %c0_37] : memref<1x8x32xf32, #tpu.memory_space<vmem>>, vector<1x8x32xf32>
      %58 = vector.shape_cast %57 : vector<1x8x32xf32> to vector<8x32xf32>
      %59 = vector.shape_cast %56 : vector<8x32xf32> to vector<1x8x32xf32>
      tpu.vector_store %arg11[%c0_35, %c0_36, %c0_37], %59 {strides = array<i32>} : memref<1x8x32xf32, #tpu.memory_space<vmem>>, vector<1x8x32xf32>,
    } else {
    }
    return
  }
  func.func @transform_0(%arg0: i32, %arg1: i32, %arg2: i32) -> (i32, i32, i32, i32) {
    %c0_i32 = arith.constant 0 : i32
    %c0_i32_0 = arith.constant 0 : i32
    return %arg0, %arg1, %arg2, %c0_i32 : i32, i32, i32, i32
  }
  func.func @transform_1(%arg0: i32, %arg1: i32, %arg2: i32) -> (i32, i32) {
    %c0_i32 = arith.constant 0 : i32
    %c0_i32_0 = arith.constant 0 : i32
    return %arg2, %c0_i32 : i32, i32
  }
  func.func @transform_2(%arg0: i32, %arg1: i32, %arg2: i32) -> (i32, i32) {
    %c0_i32 = arith.constant 0 : i32
    %c0_i32_0 = arith.constant 0 : i32
    %c0_i32_1 = arith.constant 0 : i32
    return %c0_i32, %c0_i32_0 : i32, i32
  }
  func.func @transform_3(%arg0: i32, %arg1: i32, %arg2: i32) -> (i32, i32) {
    %c0_i32 = arith.constant 0 : i32
    %c0_i32_0 = arith.constant 0 : i32
    %c0_i32_1 = arith.constant 0 : i32
    return %c0_i32, %c0_i32_0 : i32, i32
  }
  func.func @transform_4(%arg0: i32, %arg1: i32, %arg2: i32) -> (i32, i32) {
    %c0_i32 = arith.constant 0 : i32
    %c0_i32_0 = arith.constant 0 : i32
    %c0_i32_1 = arith.constant 0 : i32
    return %c0_i32, %c0_i32_0 : i32, i32
  }
  func.func @transform_5(%arg0: i32, %arg1: i32, %arg2: i32) -> (i32, i32) {
    %c0_i32 = arith.constant 0 : i32
    %c0_i32_0 = arith.constant 0 : i32
    %c0_i32_1 = arith.constant 0 : i32
    return %c0_i32, %c0_i32_0 : i32, i32
  }
  func.func @transform_6(%arg0: i32, %arg1: i32, %arg2: i32) -> (i32, i32) {
    %c0_i32 = arith.constant 0 : i32
    %c0_i32_0 = arith.constant 0 : i32
    %c0_i32_1 = arith.constant 0 : i32
    return %c0_i32, %c0_i32_0 : i32, i32
  }
  func.func @transform_7(%arg0: i32, %arg1: i32, %arg2: i32) -> (i32, i32) {
    %c0_i32 = arith.constant 0 : i32
    %c0_i32_0 = arith.constant 0 : i32
    %c0_i32_1 = arith.constant 0 : i32
    return %c0_i32, %c0_i32_0 : i32, i32
  }
  func.func @transform_8(%arg0: i32, %arg1: i32, %arg2: i32) -> (i32, i32, i32) {
    %c0_i32 = arith.constant 0 : i32
    %c0_i32_0 = arith.constant 0 : i32
    return %arg0, %arg1, %c0_i32 : i32, i32, i32
  }
}

</mosaic_0001>

<bundles_post_ra>
// kernel: tpu_custom_call.1
= control target key start
LH: loop header
LB: loop body
LE: loop exit
PB: predicated region body
PF: predicated region fallthrough
CT: control target
= control target key end

     0   :  { %s1333_s0 = inlined_call_operand.hbm [shape: f32[2,8,4,32], index: 0, kind: input, shape index: {}]   ;;  %s1334_s1 = inlined_call_operand.vmem [shape: f32[4,1], index: 1, kind: input, shape index: {}]   ;;  %s1335_s2 = inlined_call_operand.vmem [shape: f32[1,32], index: 2, kind: input, shape index: {}]   ;;  %s1336_s3 = inlined_call_operand.vmem [shape: f32[1,32], index: 3, kind: input, shape index: {}]   ;;  %s1337_s4 = inlined_call_operand.hbm [shape: bf16[32,32], index: 4, kind: input, shape index: {}]   ;;  %s1338_s5 = inlined_call_operand.vmem [shape: f32[1,32], index: 5, kind: input, shape index: {}]   ;;  %s1339_s6 = inlined_call_operand.hbm [shape: bf16[32,32], index: 6, kind: input, shape index: {}]   ;;  %s1340_s7 = inlined_call_operand.vmem [shape: f32[1,32], index: 7, kind: input, shape index: {}]   ;;  %s1341_s8 = inlined_call_operand.hbm [shape: f32[2,8,32], index: 8, kind: output, shape index: {}]  }
   0x1   :  { %1347 = sst [smem:[#allocation16_spill]] %s1337_s4 }
   0x2   :  { %1348 = sst [smem:[#allocation17_spill]] %s1339_s6 }
   0x3   :  { %13 = vsyncpa [#allocation4], 0 }
   0x4   :  { %15 = vsyncpa [#allocation4 + $0x1], 0 }
   0x5   :  { %16 = vsyncpa [#allocation7], 0 }
   0x6   :  { %17 = vsyncpa [#allocation5], 0 }
   0x7   :  { %19 = vsyncpa [#allocation5 + $0x1], 0  ;;  %s1146_s27 = smov 0   ;;  %s1148_s28 = smov 0  }
   0x8   :  { %s1150_s29 = smov 0   ;;  %s1152_s30 = smov 0  }
   0x9   :  { %s1154_s9 = smov 0   ;;  %s1156_s10 = smov 0  }
   0xa LB: > { %1349 = sst [smem:[#allocation13_spill]] %s1072_s27  ;;  %s777_s11 = sadd.s32 4294967295, %s1092_s10   ;;  %s1092_s10 = sphi %s1156_s10, %s25_s10   ;;  %s1088_s9 = sphi %s1154_s9, %s1368_s9   ;;  %s1084_s30 = sphi %s1152_s30, %s1367_s30   ;;  %s1080_s29 = sphi %s1150_s29, %s1366_s29   ;;  %s1076_s28 = sphi %s1148_s28, %s1365_s28   ;;  %s1072_s27 = sphi %s1146_s27, %s1364_s27  }
   0xb   : > { %s778_s12 = sadd.s32 4294967294, %s1092_s10   ;;  %p68_p0 = scmp.ne.s32.totalorder %s1076_s28, %s1072_s27 }
   0xc   : > { %p1182_p1 = scmp.eq.s32.totalorder %s777_s11, 0  ;;  %p252_p2 = scmp.eq.s32.totalorder %s778_s12, 1 }
   0xd   : > { %p779_p4 = scmp.ge.s32.totalorder %s1092_s10, 1  ;;  %p259_p6 = scmp.lt.s32.totalorder %s1092_s10, 3 }
   0xe   : > { %p1188_p3 = por %p1182_p1, %p68_p0  ;;  %p1193_p5 = por %p252_p2, %p68_p0 }
   0xf   : > { %s1354_s4 = sld [smem:[#allocation16_spill]]  ;;  %p1201_p7 = pnand %p779_p4, %p259_p6 }
  0x10   : > { %s1352_s15 = scalar_select %p1193_p5, 1, 0 }
  0x11   : > { %p831_p8 = pneg %p1201_p7  ;;  %s1094_s20 = smov [#allocation6]  }
  0x12   : > { %1353 = sst [smem:[#allocation14_spill]] %s1352_s15  ;;  %s285_s21 = sshll.u32 %s1094_s20, 4  ;;  %s286_s21 = int_to_ptr.vmem [resolvable:$true] %s285_s21 }
  0x13   : > { %p832_p9 = pnand %p831_p8, %p1182_p1  ;;  %p783_p10 = scmp.ge.s32.totalorder %s1092_s10, 2 }
  0x14   : > { %s1356_s6 = sld [smem:[#allocation17_spill]]  ;;  %s1342_s25 = smov 64  }
  0x15   : > { %s283_s18 = sshll.u32 %s1354_s4, 4  ;;  %s1343_s26 = smov 4   ;;  %s284_s18 = int_to_ptr.hbm [resolvable:$true] %s283_s18 }
  0x16   : > { %834 = dma.hbm_to_vmem [thread:$0]  (!%p832_p9), %s284_s18, 256, %s286_s21, [#allocation7], %s1342_s25, %s1342_s25, %s1343_s26  }
  0x17   : > { %s1097_s12 = smov [#allocation8]   ;;  %p246_p11 = scmp.eq.s32.totalorder %s777_s11, 1 }
  0x18   : > { %s302_s16 = sshll.u32 %s1097_s12, 4  ;;  %s44_s17 = sadd.s32 1, %s1088_s9  ;;  %s303_s16 = int_to_ptr.vmem [resolvable:$true] %s302_s16 }
  0x19   : > { %p46_p12 = scmp.ge.s32.totalorder %s44_s17, 2  ;;  %s55_s20 = sadd.s32 1, %s1080_s29 }
  0x1a   : > { %s300_s24 = sshll.u32 %s1356_s6, 4  ;;  %p62_p13 = scmp.ne.s32.totalorder %s1080_s29, %s1076_s28  ;;  %s301_s24 = int_to_ptr.hbm [resolvable:$true] %s300_s24 }
  0x1b   : > { %837 = dma.hbm_to_vmem [thread:$0]  (!%p832_p9), %s301_s24, 256, %s303_s16, [#allocation7], %s1342_s25, %s1342_s25, %s1343_s26  }
  0x1c   : > { %p63_p0 = scmp.eq.s32.totalorder %s1092_s10, 0  ;;  %s1370_s17 = smov (%p46_p12, %s44_s17), 0 }
  0x1d   : > { %1357 = sst [smem:[#allocation15_spill]] %s1370_s17  ;;  %p1228_p2 = por %p246_p11, %p62_p13 }
  0x1e   : > { %p848_p4 = scmp.lt.s32.totalorder %s1092_s10, 2  ;;  %s48_s21 = ssub.s32 %s1088_s9, %s1370_s17 }
  0x1f   : > { %s319_s22 = sand.u32 1, %s1080_s29   ;;  %p53_p6 = scmp.eq.s32.totalorder %s48_s21, 0 }
  0x20   : > { %p64_p8 = por %p63_p0, %p62_p13  ;;  %s784_s23 = sshll.u32 %s319_s22, 5 }
  0x21   : > { %s814_s11 = sshll.u32 %s1088_s9, 5  ;;  %s323_s4 = scalar_lea.vmem [#allocation3], %s784_s23 }
  0x22   : > { %s1238_s24 = scalar_select %p53_p6, %s1080_s29, %s55_s20  }
  0x23   : > { %s331_s25 = scalar_lea.hbm %s1333_s0, %s814_s11  ;;  %s334_s6 = sshll.u32 %s323_s4, 4  ;;  %s335_s6 = int_to_ptr.vmem [resolvable:$true] %s334_s6 }
  0x24   : > { %s332_s26 = sshll.u32 %s331_s25, 4  ;;  %p839_p9 = pnand %p848_p4, %p64_p8  ;;  %s333_s26 = int_to_ptr.hbm [resolvable:$true] %s332_s26 }
  0x25   : > { %s320_s15 = scalar_lea.sflag [#allocation4], %s319_s22  ;;  %s1359_s17 = smov 4  }
  0x26   : > { %s1360_s27 = smov 64   ;;  %346 = sbr.rel (%p1201_p7) target bundleno = 614 (0x266), region = 52 }
  0x27   : > { %841 = dma.hbm_to_vmem [thread:$0]  (!%p839_p9), %s333_s26, 512, %s335_s6, %s320_s15, %s1360_s27, %s1360_s27, %s1359_s17  }
  0x28   : > { %s1251_s20 = sand.u32 (!%p1201_p7), 1, %s1076_s28  }
  0x29   : > { %s788_s25 = sshll.u32 (!%p1201_p7), %s1251_s20, 5  ;;  %s349_s4 = scalar_lea.sflag (!%p1201_p7), [#allocation4], %s1251_s20 }
  0x2a   : > { %s352_s21 = scalar_lea.vmem (!%p1201_p7), [#allocation3], %s788_s25 }
  0x2b   : > { %1059 = dma.done.wait (%p1188_p3), %s349_s4, 512  }
  0x2c   : > { %1061 = vsyncadd (%p1188_p3), %s349_s4, 4294966784 }
  0x2d   : > { %1063 = dma.done.wait (%p1182_p1), [#allocation7], 512  }
  0x2e   : > { %1065 = vsyncadd (%p1182_p1), [#allocation7], 4294966784  ;;  %v1098_v0 = vmov 0   ;;  %v414_v1 = vld [vmem:[%s1334_s1] sm:$0xf]  ;;  %vm489_vm0 = vcmask 261120  }
  0x2f   : > { %907 = vset.pattern.permute.xlu0 %v1098_v0  ;;  %v1099_v2 = vmov 0.0   ;;  %v406_v3 = vld [vmem:[%s352_s21] sm:$0xf]  ;;  %v407_v4 = vld [vmem:[%s352_s21 + $0x4] sm:$0xf]  ;;  %vm428_vm1 = vcmask 257024  }
  0x30   : > { %417 = vperm.xlu0 %907, %v414_v1   ;;  %490 = vst.msk [vmem:[#allocation2] sm:$0xff] %vm489_vm0, %v1099_v2  ;;  %v408_v5 = vld [vmem:[%s352_s21 + $0x8] sm:$0xf]  ;;  %v409_v6 = vld [vmem:[%s352_s21 + $0xc] sm:$0xf]  ;;  %vm500_vm2 = vcmask 1041409  }
  0x31   : > { %v410_v7 = vld [vmem:[%s352_s21 + $0x10] sm:$0xf]  ;;  %v411_v8 = vld [vmem:[%s352_s21 + $0x14] sm:$0xf]  ;;  %v412_v9 = vld [vmem:[%s352_s21 + $0x18] sm:$0xf] }
  0x32   : > { %v413_v10 = vld [vmem:[%s352_s21 + $0x1c] sm:$0xf]  ;;  %vm502_vm3 = vcmask 1042434   ;;  %vm504_vm4 = vcmask 1043459   ;;  %vm506_vm5 = vcmask 1044484   ;;  %vm508_vm6 = vcmask 1045509  }
  0x33   : > { %vm510_vm7 = vcmask 1046534   ;;  %vm512_vm8 = vcmask 1047559   ;;  %s811_s22 = sshll.u32 %s1084_s30, 3  ;;  %s791_s23 = sshll.u32 %s1251_s20, 3 }
  0x34   : > { %s652_s16 = scalar_lea.hbm %s1341_s8, %s811_s22  ;;  %s399_s21 = scalar_lea.vmem [#allocation9], %s791_s23 }
  0x35   : > { %s654_s6 = sshll.u32 %s399_s21, 4  ;;  %s656_s27 = sshll.u32 %s652_s16, 4  ;;  %s655_s6 = int_to_ptr.vmem [resolvable:$true] %s654_s6  ;;  %s657_s27 = int_to_ptr.hbm [resolvable:$true] %s656_s27 }
  0x36   : > { %s641_s30 = scalar_lea.sflag [#allocation5], %s1251_s20  ;;  %s1020_s13 = sshra.s32 %s657_s27, 4  ;;  %s1021_s13 = int_to_ptr.hbm [resolvable:$true] %s1020_s13 }
  0x37   : > { %s1022_s14 = scalar_lea.hbm %s1021_s13, 8  ;;  %s1026_s26 = scalar_lea.hbm %s1341_s8, 16 }
  0x38   : > { %p1023_p1 = scmp.ne.s32.totalorder %s1021_s13, %s1022_s14  ;;  %p1027_p11 = scmp.lt.s32.totalorder %s1021_s13, %s1341_s8 }
  0x39   : > { %p1028_p12 = scmp.lt.s32.totalorder %s1026_s26, %s1022_s14 }
  0x3a   : > { %p1024_p3 = pnand %p1023_p1, %p1228_p2 }
  0x3b   : > { %p1029_p13 = por %p1028_p12, %p1027_p11 }
  0x3c   : > { %p1025_p7 = pneg %p1024_p3 }
  0x3e   : > { %p1030_p0 = pnand %p1029_p13, %p1025_p7 }
  0xa2   : > { %v418_v11 = vpop.permute.xlu0 %417 }
  0xa3   : > { %v420_v12 = vmul.f32 %v418_v11, %v406_v3  ;;  %v421_v13 = vmul.f32 %v418_v11, %v407_v4  ;;  %v422_v14 = vmul.f32 %v418_v11, %v408_v5  ;;  %v423_v15 = vmul.f32 %v418_v11, %v409_v6 }
  0xa4   : > { %v424_v16 = vmul.f32 %v418_v11, %v410_v7  ;;  %v425_v17 = vmul.f32 %v418_v11, %v411_v8  ;;  %v426_v18 = vmul.f32 %v418_v11, %v412_v9  ;;  %v427_v19 = vmul.f32 %v418_v11, %v413_v10 }
  0xa5   : > { %v429_v20 = vsel %vm428_vm1, %v420_v12, 0.0  ;;  %v436_v21 = vsel %vm428_vm1, %v421_v13, 0.0  ;;  %v443_v22 = vsel %vm428_vm1, %v422_v14, 0.0  ;;  %v450_v23 = vsel %vm428_vm1, %v423_v15, 0.0 }
  0xa6   : > { %v430_v24 = vrot.slane %v429_v20, 4  ;;  %v437_v25 = vrot.slane %v436_v21, 4  ;;  %v444_v26 = vrot.slane %v443_v22, 4  ;;  %v451_v27 = vrot.slane %v450_v23, 4 }
  0xa7   : > { %v457_v28 = vsel %vm428_vm1, %v424_v16, 0.0  ;;  %v464_v29 = vsel %vm428_vm1, %v425_v17, 0.0  ;;  %v471_v30 = vsel %vm428_vm1, %v426_v18, 0.0  ;;  %v478_v31 = vsel %vm428_vm1, %v427_v19, 0.0  ;;  %v491_v17 = vld [vmem:[#allocation2] sm:$0xff] }
  0xa8   : > { %v431_v32 = vadd.f32 %v430_v24, %v429_v20  ;;  %v438_v33 = vadd.f32 %v437_v25, %v436_v21  ;;  %v445_v34 = vadd.f32 %v444_v26, %v443_v22  ;;  %v452_v35 = vadd.f32 %v451_v27, %v450_v23 }
  0xa9   : > { %v458_v36 = vrot.slane %v457_v28, 4  ;;  %v465_v37 = vrot.slane %v464_v29, 4  ;;  %v472_v38 = vrot.slane %v471_v30, 4  ;;  %v479_v39 = vrot.slane %v478_v31, 4 }
  0xaa   : > { %v432_v40 = vrot.slane %v431_v32, 2  ;;  %v439_v41 = vrot.slane %v438_v33, 2  ;;  %v446_v42 = vrot.slane %v445_v34, 2  ;;  %v453_v43 = vrot.slane %v452_v35, 2 }
  0xab   : > { %v459_v44 = vadd.f32 %v458_v36, %v457_v28  ;;  %v466_v45 = vadd.f32 %v465_v37, %v464_v29  ;;  %v473_v46 = vadd.f32 %v472_v38, %v471_v30  ;;  %v480_v47 = vadd.f32 %v479_v39, %v478_v31  ;;  %v816_v31 = vld [vmem:[#allocation6 + $0x8] sm:$0xff] }
  0xac   : > { %v433_v48 = vadd.f32 %v432_v40, %v431_v32  ;;  %v440_v49 = vadd.f32 %v439_v41, %v438_v33  ;;  %v447_v50 = vadd.f32 %v446_v42, %v445_v34  ;;  %v454_v51 = vadd.f32 %v453_v43, %v452_v35  ;;  %594 = vmatpush.bf16.msra.mxu0 %v816_v31  ;;  %v815_v32 = vld [vmem:[#allocation6] sm:$0xff] }
  0xad   : > { %v460_v52 = vrot.slane %v459_v44, 2  ;;  %v467_v53 = vrot.slane %v466_v45, 2  ;;  %v474_v54 = vrot.slane %v473_v46, 2  ;;  %v481_v55 = vrot.slane %v480_v47, 2 }
  0xae   : > { %v434_v56 = vrot.slane %v433_v48, 1  ;;  %v441_v57 = vrot.slane %v440_v49, 1  ;;  %v448_v58 = vrot.slane %v447_v50, 1  ;;  %v455_v59 = vrot.slane %v454_v51, 1 }
  0xaf   : > { %v461_v60 = vadd.f32 %v460_v52, %v459_v44  ;;  %v468_v61 = vadd.f32 %v467_v53, %v466_v45  ;;  %v475_v62 = vadd.f32 %v474_v54, %v473_v46  ;;  %v482_v63 = vadd.f32 %v481_v55, %v480_v47  ;;  %v909_v52 = vld [vmem:[%s1336_s3] ss:$0 sm:$0xff] }
  0xb0   : > { %v435_v0 = vadd.f32 %v434_v56, %v433_v48  ;;  %v442_v1 = vadd.f32 %v441_v57, %v440_v49  ;;  %v449_v2 = vadd.f32 %v448_v58, %v447_v50  ;;  %v456_v7 = vadd.f32 %v455_v59, %v454_v51  ;;  %595 = vmatpush.bf16.msra.mxu0 %v815_v32  ;;  %v908_v49 = vld [vmem:[%s1335_s2] ss:$0 sm:$0xff]  ;;  %v817_v57 = vld [vmem:[#allocation8] sm:$0xff] }
  0xb1   : > { %v462_v3 = vrot.slane %v461_v60, 1  ;;  %v469_v4 = vrot.slane %v468_v61, 1  ;;  %v476_v5 = vrot.slane %v475_v62, 1  ;;  %v483_v8 = vrot.slane %v482_v63, 1  ;;  %v818_v56 = vld [vmem:[#allocation8 + $0x8] sm:$0xff] }
  0xb2   : > { %v501_v6 = vsel %vm500_vm2, %v442_v1, %v435_v0  ;;  %v1100_v25 = vmov 32.0   ;;  %632 = vmatpush.bf16.msra.mxu1 %v818_v56  ;;  %v910_v58 = vld [vmem:[%s1338_s5] ss:$0 sm:$0xff] }
  0xb3   : > { %v463_v9 = vadd.f32 %v462_v3, %v461_v60  ;;  %v503_v10 = vsel %vm502_vm3, %v449_v2, %v501_v6  ;;  %v470_v11 = vadd.f32 %v469_v4, %v468_v61  ;;  %v477_v13 = vadd.f32 %v476_v5, %v475_v62  ;;  %v911_v0 = vld [vmem:[%s1340_s7] ss:$0 sm:$0xff] }
  0xb4   : > { %v505_v12 = vsel %vm504_vm4, %v456_v7, %v503_v10  ;;  %v484_v15 = vadd.f32 %v483_v8, %v482_v63  ;;  %912 = vrcp.f32 %v1100_v25 }
  0xb5   : > { %v507_v14 = vsel %vm506_vm5, %v463_v9, %v505_v12 }
  0xb6   : > { %v509_v16 = vsel %vm508_vm6, %v470_v11, %v507_v14  ;;  %633 = vmatpush.bf16.msra.mxu1 %v817_v57 }
  0xb7   : > { %v511_v18 = vsel %vm510_vm7, %v477_v13, %v509_v16 }
  0xb8   : > { %v513_v19 = vsel %vm512_vm8, %v484_v15, %v511_v18 }
  0xb9   : > { %v515_v20 = vadd.f32 %v513_v19, %v491_v17 }
  0xba   : > { %v913_v26 = vpop.eup %912 }
  0xbb   : > { %517 = vst.msk [vmem:[#allocation2] sm:$0xff] %vm489_vm0, %v515_v20  ;;  %v528_v27 = vmul.f32 32.0, %v913_v26  ;;  %vm532_vm9 = vweird.f32 %v913_v26 }
  0xbd   : > { %v529_v28 = vsub.f32 1.0, %v528_v27 }
  0xbf   : > { %v530_v29 = vmul.f32 %v913_v26, %v529_v28 }
  0xc1   : > { %v531_v30 = vadd.f32 %v913_v26, %v530_v29 }
  0xc2   : > { %v521_v21 = vld [vmem:[#allocation2] sm:$0xff] }
  0xc3   : > { %v524_v22 = vsel %vm489_vm0, %v521_v21, 0.0  ;;  %v535_v23 = vmul.f32 %v521_v21, %v521_v21  ;;  %v533_v33 = vsel %vm532_vm9, %v913_v26, %v531_v30 }
  0xc4   : > { %525 = vadd.xlane.f32.xlu0 %v524_v22 }
  0xc5   : > { %v536_v24 = vsel %vm489_vm0, %v535_v23, 0.0 }
  0xc6   : > { %537 = vadd.xlane.f32.xlu1 %v536_v24 }
 0x137   : > { %v526_v34 = vpop.xlane.xlu0 %525 }
 0x138   : > { %v534_v35 = vmul.f32 %v533_v33, %v526_v34 }
 0x139   : > { %v538_v36 = vpop.xlane.xlu1 %537 }
 0x13a   : > { %v540_v37 = vmul.f32 %v534_v35, %v534_v35  ;;  %v539_v38 = vmul.f32 %v538_v36, %v533_v33  ;;  %v543_v48 = vsub.f32 %v521_v21, %v534_v35 }
 0x13c   : > { %v541_v39 = vsub.f32 %v539_v38, %v540_v37 }
 0x13e   : > { %v542_v40 = vmax.f32 %v541_v39, 0.0 }
 0x140   : > { %v544_v41 = vadd.f32 1e-05, %v542_v40 }
 0x142   : > { %914 = vrsqrt.f32 %v544_v41  ;;  %vm551_vm11 = vweird.f32 %v544_v41 }
 0x148   : > { %v915_v42 = vpop.eup %914 }
 0x149   : > { %v546_v43 = vmul.f32 %v915_v42, %v544_v41  ;;  %vm552_vm10 = vweird.f32 %v915_v42 }
 0x14a   : > { %vm553_vm12 = vmor %vm551_vm11, %vm552_vm10 }
 0x14b   : > { %v547_v44 = vmul.f32 %v915_v42, %v546_v43 }
 0x14d   : > { %v548_v45 = vmul.f32 0.5, %v547_v44 }
 0x14f   : > { %v549_v46 = vsub.f32 1.5, %v548_v45 }
 0x151   : > { %v550_v47 = vmul.f32 %v915_v42, %v549_v46 }
 0x153   : > { %v554_v50 = vsel %vm553_vm12, %v915_v42, %v550_v47 }
 0x154   : > { %v555_v51 = vmul.f32 %v554_v50, %v543_v48 }
 0x156   : > { %v559_v53 = vmul.f32 %v908_v49, %v555_v51 }
 0x158   : > { %v563_v54 = vadd.f32 %v909_v52, %v559_v53 }
 0x15a   : > { %v564_v55 = vpack.c.bf16 %v563_v54, %v563_v54 }
 0x15c   : > { %800 = vmatmul.msk.bf16.vlgmr.msra.gmra.mxu0 %vm489_vm0, %v564_v55 }
 0x1d9   : > { %v597_v59 = vpop.f32.mrf.mxu0 }
 0x1da   : > { %v598_v60 = vadd.f32 %v910_v58, %v597_v59 }
 0x1dc   : > { %v601_v61 = vmax.f32 %v598_v60, 0.0 }
 0x1de   : > { %v602_v62 = vpack.c.bf16 %v601_v61, %v601_v61 }
 0x1e0   : > { %809 = vmatmul.msk.bf16.vlgmr.msra.gmra.mxu1 %vm489_vm0, %v602_v62 }
 0x1e1   : > { %v599_v63 = vpop.f32.mrf.mxu0 }
 0x25d   : > { %v635_v1 = vpop.f32.mrf.mxu1 }
 0x25e   : > { %v636_v2 = vadd.f32 %v911_v0, %v635_v1 }
 0x260   : > { %639 = vst.msk [vmem:[%s399_s21] sm:$0xff] %vm489_vm0, %v636_v2 }
 0x261   : > { %1033 = shalt.err (!%p1030_p0)
}
 0x262   : > { %829 = dma.vmem_to_hbm [thread:$0]  (%p1228_p2), %s655_s6, 128, %s657_s27, %s641_s30  }
 0x265   : > { %v637_v3 = vpop.f32.mrf.mxu1 }
 0x266 PF: > { %s1361_s20 = sld [smem:[#allocation13_spill]]  ;;  %p843_p4 = pnand %p783_p10, %p1193_p5 }
 0x268   : > { %p844_p6 = pneg %p843_p4 }
 0x26c   : > { %s668_s11 = sand.u32 1, %s1361_s20  }
 0x26d   : > { %s669_s12 = scalar_lea.sflag [#allocation5], %s668_s11 }
 0x26e   : > { %1067 = dma.done.wait (%p844_p6), %s669_s12, 128  }
 0x26f   : > { %1069 = vsyncadd (%p844_p6), %s669_s12, 4294967168  ;;  %s25_s10 = sadd.s32 1, %s1092_s10   ;;  %s1363_s18 = sld [smem:[#allocation15_spill]] }
 0x270   : > { %p22_p8 = scmp.ge.s32.totalorder %s25_s10, 4   ;;  %s1364_s27 = smov %s1076_s28 }
 0x271   : > { %s1365_s28 = smov %s1080_s29  ;;  %s1366_s29 = smov %s1238_s24 }
 0x272   : > { %s1367_s30 = smov %s1088_s9  ;;  %24 = sbr.rel (!%p22_p8) target bundleno = 10 (0xa), region = 116 }
 0x275   : > { %s1368_s9 = smov %s1363_s18 }
 0x277   :  { %675 = vsyncpa [#allocation4], 1 }
 0x278   :  { %677 = vsyncpa [#allocation4 + $0x1], 1 }
 0x279   :  { %678 = vsyncpa [#allocation7], 1 }
 0x27a   :  { %679 = vsyncpa [#allocation5], 1 }
 0x27b   :  { %681 = vsyncpa [#allocation5 + $0x1], 1 }

</bundles_post_ra>
